<compile_context>
chip_gen: v7x
topology: tpu7x:2x2x1
jax: 0.10.0
libtpu: 0.0.40
codegen_flags: <defaults>
</compile_context>

<pallas_src>
import functools
import numpy as np

import jax
import jax.numpy as jnp
from jax.experimental import pallas as pl
from jax.experimental.pallas import tpu as pltpu


def _cgm_kernel(zt_ref, ctxt_ref, w1t_ref, b1_ref, g_ref, beta_ref,
                w2tw_ref, b2w_ref, w2tl_ref, b2l_ref,
                invscale_ref, sumls_ref, sel_ref, out_ref,
                *, n_modes, n_modes_pad, dim):
    ctx = ctxt_ref[...]                         # (C, TB)   f32, batch in lanes
    zt = zt_ref[...]                            # (dim, TB) f32

    # --- context_encoder: Linear(C, C) + LeakyReLU(0.2)  (transposed) ---
    h = jnp.dot(w1t_ref[...], ctx, preferred_element_type=jnp.float32) + b1_ref[...]
    h = jnp.where(h >= 0, h, 0.2 * h)

    # --- LayerNorm(C) over the feature (sublane) axis ---
    mean = jnp.mean(h, axis=0, keepdims=True)
    var = jnp.mean((h - mean) ** 2, axis=0, keepdims=True)
    h = (h - mean) * jax.lax.rsqrt(var + 1e-5)
    h = h * g_ref[...] + beta_ref[...]

    # --- Linear(C, n_modes + n_modes*dim) + LeakyReLU(0.2), split into two
    #     lane-dense matmuls: mode logits (padded to 8 sublanes) | means slab ---
    w = jnp.dot(w2tw_ref[...], h, preferred_element_type=jnp.float32) + b2w_ref[...]
    w = jnp.where(w >= 0, w, 0.2 * w)           # (MP, TB); rows >= n_modes are pad
    loc = jnp.dot(w2tl_ref[...], h, preferred_element_type=jnp.float32) + b2l_ref[...]
    loc = jnp.where(loc >= 0, loc, 0.2 * loc)   # (n_modes*dim, TB)

    # mask padded mode rows out of the softmax
    row = jax.lax.broadcasted_iota(jnp.int32, (n_modes_pad, 1), 0)
    w = jnp.where(row < n_modes, w, -1e30)

    # --- log softmax over modes (sublane axis) ---
    w_max = jnp.max(w, axis=0, keepdims=True)
    logw = w - (w_max + jnp.log(jnp.sum(jnp.exp(w - w_max), axis=0, keepdims=True)))

    # --- Gaussian quadratic form: one slab + block-diagonal selector matmul ---
    z_rep = jnp.concatenate([zt] * n_modes, axis=0)            # (n_modes*dim, TB)
    eps = (z_rep - loc) * invscale_ref[...]                    # (n_modes*dim, TB)
    quad = jnp.dot(sel_ref[...], eps * eps,
                   preferred_element_type=jnp.float32)          # (MP, TB)

    const = -0.5 * dim * float(np.log(2.0 * np.pi))
    log_p = const + logw - 0.5 * quad - sumls_ref[...]          # (MP, TB); pad rows ~ -1e30

    # --- logsumexp over modes -> lane-dense (1, TB) output row ---
    mx = jnp.max(log_p, axis=0, keepdims=True)
    out_ref[...] = mx + jnp.log(jnp.sum(jnp.exp(log_p - mx), axis=0, keepdims=True))


def conditional_gaussian_mixture_logprob(z, context, params, *, n_modes, dim,
                                         block_b=256):
    B = z.shape[0]
    C = context.shape[1]
    K_loc = n_modes * dim
    MP = max(8, ((n_modes + 7) // 8) * 8)       # mode axis padded to a sublane multiple

    # lane-dense batch tile (multiple of 128), no larger than needed
    block_b = max(128, (int(block_b) // 128) * 128)
    block_b = min(block_b, ((B + 127) // 128) * 128)
    Bp = pl.cdiv(B, block_b) * block_b
    pad = Bp - B

    f32 = jnp.float32
    # ---- layout plumbing + grid-invariant constant hoisting (done once in XLA) ----
    zT = jnp.pad(z.astype(f32), ((0, pad), (0, 0))).T            # (dim, Bp)
    ctxT = jnp.pad(context.astype(f32), ((0, pad), (0, 0))).T    # (C, Bp)
    w1T = params["w1"].astype(f32).T                             # (C, C)
    b1 = params["b1"].astype(f32).reshape(C, 1)
    gamma = params["gamma"].astype(f32).reshape(C, 1)
    beta = params["beta"].astype(f32).reshape(C, 1)
    w2 = params["w2"].astype(f32)                                # (C, n_modes + K_loc)
    b2 = params["b2"].astype(f32).reshape(-1)
    w2T_w = jnp.zeros((MP, C), f32).at[:n_modes].set(w2[:, :n_modes].T)
    b2_w = jnp.zeros((MP, 1), f32).at[:n_modes, 0].set(b2[:n_modes])
    w2T_l = w2[:, n_modes:].T                                    # (K_loc, C)
    b2_l = b2[n_modes:].reshape(K_loc, 1)
    ls = params["log_scale"].astype(f32)                         # (n_modes, dim)
    inv_scale = jnp.exp(-ls).reshape(K_loc, 1)                   # hoisted exp(-log_scale)
    sum_ls = jnp.zeros((MP, 1), f32).at[:n_modes, 0].set(jnp.sum(ls, axis=1))
    sel_np = np.zeros((MP, K_loc), np.float32)                   # block-diagonal 0/1 selector
    sel_np[:n_modes, :] = np.kron(np.eye(n_modes, dtype=np.float32),
                                  np.ones((1, dim), np.float32))
    sel = jnp.asarray(sel_np)

    grid = (Bp // block_b,)
    kernel = functools.partial(_cgm_kernel, n_modes=n_modes, n_modes_pad=MP, dim=dim)
    out = pl.pallas_call(
        kernel,
        out_shape=jax.ShapeDtypeStruct((1, Bp), jnp.float32),
        grid=grid,
        in_specs=[
            pl.BlockSpec((dim, block_b), lambda i: (0, i)),      # z^T
            pl.BlockSpec((C, block_b), lambda i: (0, i)),        # context^T
            pl.BlockSpec((C, C), lambda i: (0, 0)),              # W1^T
            pl.BlockSpec((C, 1), lambda i: (0, 0)),              # b1
            pl.BlockSpec((C, 1), lambda i: (0, 0)),              # LayerNorm gamma
            pl.BlockSpec((C, 1), lambda i: (0, 0)),              # LayerNorm beta
            pl.BlockSpec((MP, C), lambda i: (0, 0)),             # W2^T (logits, padded)
            pl.BlockSpec((MP, 1), lambda i: (0, 0)),             # b2   (logits, padded)
            pl.BlockSpec((K_loc, C), lambda i: (0, 0)),          # W2^T (means)
            pl.BlockSpec((K_loc, 1), lambda i: (0, 0)),          # b2   (means)
            pl.BlockSpec((K_loc, 1), lambda i: (0, 0)),          # exp(-log_scale)
            pl.BlockSpec((MP, 1), lambda i: (0, 0)),             # per-mode sum(log_scale)
            pl.BlockSpec((MP, K_loc), lambda i: (0, 0)),         # block-diag selector
        ],
        out_specs=pl.BlockSpec((1, block_b), lambda i: (0, i)),  # lane-dense output row
        compiler_params=pltpu.CompilerParams(dimension_semantics=("parallel",)),
    )(zT, ctxT, w1T, b1, gamma, beta, w2T_w, b2_w, w2T_l, b2_l, inv_scale, sum_ls, sel)
    return out[0, :B]


def init_params(key, context_size, n_modes, dim):
    """Deterministic synthetic init mirroring the PyTorch shapes."""
    K = n_modes + n_modes * dim
    k1, k2, k3, k4, k5 = jax.random.split(key, 5)
    lim = 1.0 / float(np.sqrt(context_size))
    w1 = jax.random.uniform(k1, (context_size, context_size), jnp.float32, -lim, lim)
    b1 = jax.random.uniform(k2, (1, context_size), jnp.float32, -lim, lim)
    gamma = jnp.ones((1, context_size), jnp.float32)
    beta = jnp.zeros((1, context_size), jnp.float32)
    w2 = jax.random.uniform(k3, (context_size, K), jnp.float32, -lim, lim)
    b2 = jax.random.uniform(k4, (1, K), jnp.float32, -lim, lim)
    # xavier_uniform on (1, n_modes, dim): fan_in = n_modes*dim, fan_out = dim
    bound = float(np.sqrt(6.0 / (n_modes * dim + dim)))
    log_scale = jax.random.uniform(k5, (n_modes, dim), jnp.float32, -bound, bound)
    return dict(w1=w1, b1=b1, gamma=gamma, beta=beta, w2=w2, b2=b2, log_scale=log_scale)


def ref_logprob(z, ctx, p, n_modes, dim):
    """Pure-JAX reference matching the PyTorch module exactly."""
    h = ctx @ p["w1"] + p["b1"]
    h = jnp.where(h >= 0, h, 0.2 * h)
    mean = h.mean(-1, keepdims=True)
    var = ((h - mean) ** 2).mean(-1, keepdims=True)
    h = (h - mean) / jnp.sqrt(var + 1e-5) * p["gamma"] + p["beta"]
    enc = h @ p["w2"] + p["b2"]
    enc = jnp.where(enc >= 0, enc, 0.2 * enc)
    w = enc[:, :n_modes]
    loc = enc[:, n_modes:].reshape(-1, n_modes, dim)
    logw = jax.nn.log_softmax(w, axis=1)
    ls = p["log_scale"][None]                       # (1, n_modes, dim)
    eps = (z[:, None, :] - loc) / jnp.exp(ls)
    log_p = (-0.5 * dim * np.log(2 * np.pi) + logw
             - 0.5 * jnp.sum(eps ** 2, axis=2) - jnp.sum(ls, axis=2))
    return jax.nn.logsumexp(log_p, axis=1)


if __name__ == "__main__":
    B = 512             # batch (2 grid steps of 256 rows -> both v7x TCs get work)
    CONTEXT = 32        # context_size
    N_MODES = 4         # n_modes
    DIM = 8             # n_features

    key = jax.random.PRNGKey(0)
    kz, kc, kp = jax.random.split(key, 3)
    z = jax.random.normal(kz, (B, DIM), jnp.float32)
    context = jax.random.normal(kc, (B, CONTEXT), jnp.float32)
    params = init_params(kp, CONTEXT, N_MODES, DIM)

    log_p = conditional_gaussian_mixture_logprob(
        z, context, params, n_modes=N_MODES, dim=DIM, block_b=256)
    log_p = jax.block_until_ready(log_p)

    ref = ref_logprob(z, context, params, N_MODES, DIM)
    np.testing.assert_allclose(np.asarray(log_p), np.asarray(ref), rtol=5e-4, atol=5e-4)

    print("KERNEL_OK")
</pallas_src>

<mosaic_0001>
module attributes {stable_mosaic.version = 11 : i64} {
  func.func @_cgm_kernel(%arg0: i32, %arg1: memref<8x256xf32, #tpu.memory_space<vmem>>, %arg2: memref<32x256xf32, #tpu.memory_space<vmem>>, %arg3: memref<32x32xf32, #tpu.memory_space<vmem>>, %arg4: memref<32x1xf32, #tpu.memory_space<vmem>>, %arg5: memref<32x1xf32, #tpu.memory_space<vmem>>, %arg6: memref<32x1xf32, #tpu.memory_space<vmem>>, %arg7: memref<8x32xf32, #tpu.memory_space<vmem>>, %arg8: memref<8x1xf32, #tpu.memory_space<vmem>>, %arg9: memref<32x32xf32, #tpu.memory_space<vmem>>, %arg10: memref<32x1xf32, #tpu.memory_space<vmem>>, %arg11: memref<32x1xf32, #tpu.memory_space<vmem>>, %arg12: memref<8x1xf32, #tpu.memory_space<vmem>>, %arg13: memref<8x32xf32, #tpu.memory_space<vmem>>, %arg14: memref<1x256xf32, #tpu.memory_space<vmem>>) attributes {dimension_semantics = [#tpu.dimension_semantics<parallel>], iteration_bounds = array<i64: 2>, scalar_prefetch = 0 : i64, scratch_operands = 0 : i64, tpu.core_type = #tpu.core_type<tc>, window_params = [{transform_indices = @transform_0, window_bounds = array<i64: 8, 256>}, {transform_indices = @transform_1, window_bounds = array<i64: 32, 256>}, {pipeline_mode = #tpu.pipeline_mode<synchronous>, transform_indices = @transform_2, window_bounds = array<i64: 32, 32>}, {pipeline_mode = #tpu.pipeline_mode<synchronous>, transform_indices = @transform_3, window_bounds = array<i64: 32, 1>}, {pipeline_mode = #tpu.pipeline_mode<synchronous>, transform_indices = @transform_4, window_bounds = array<i64: 32, 1>}, {pipeline_mode = #tpu.pipeline_mode<synchronous>, transform_indices = @transform_5, window_bounds = array<i64: 32, 1>}, {pipeline_mode = #tpu.pipeline_mode<synchronous>, transform_indices = @transform_6, window_bounds = array<i64: 8, 32>}, {pipeline_mode = #tpu.pipeline_mode<synchronous>, transform_indices = @transform_7, window_bounds = array<i64: 8, 1>}, {pipeline_mode = #tpu.pipeline_mode<synchronous>, transform_indices = @transform_8, window_bounds = array<i64: 32, 32>}, {pipeline_mode = #tpu.pipeline_mode<synchronous>, transform_indices = @transform_9, window_bounds = array<i64: 32, 1>}, {pipeline_mode = #tpu.pipeline_mode<synchronous>, transform_indices = @transform_10, window_bounds = array<i64: 32, 1>}, {pipeline_mode = #tpu.pipeline_mode<synchronous>, transform_indices = @transform_11, window_bounds = array<i64: 8, 1>}, {pipeline_mode = #tpu.pipeline_mode<synchronous>, transform_indices = @transform_12, window_bounds = array<i64: 8, 32>}, {transform_indices = @transform_13, window_bounds = array<i64: 1, 256>}]} {
    %c0 = arith.constant 0 : index
    %c0_0 = arith.constant 0 : index
    %0 = vector.load %arg2[%c0, %c0_0] : memref<32x256xf32, #tpu.memory_space<vmem>>, vector<32x256xf32>
    %c0_1 = arith.constant 0 : index
    %c0_2 = arith.constant 0 : index
    %1 = vector.load %arg1[%c0_1, %c0_2] : memref<8x256xf32, #tpu.memory_space<vmem>>, vector<8x256xf32>
    %c0_3 = arith.constant 0 : index
    %c0_4 = arith.constant 0 : index
    %2 = vector.load %arg3[%c0_3, %c0_4] : memref<32x32xf32, #tpu.memory_space<vmem>>, vector<32x32xf32>
    %cst = arith.constant dense<0.000000e+00> : vector<32x256xf32>
    %3 = tpu.matmul %2, %0, %cst {dimension_numbers = #tpu.dot_dimension_numbers<[1], [0], [0], [1], [0, 0, 1, 1], [], []>} : vector<32x32xf32>, vector<32x256xf32>, vector<32x256xf32> -> vector<32x256xf32>
    %c0_5 = arith.constant 0 : index
    %c0_6 = arith.constant 0 : index
    %4 = vector.load %arg4[%c0_5, %c0_6] : memref<32x1xf32, #tpu.memory_space<vmem>>, vector<32x1xf32>
    %5 = vector.broadcast %4 : vector<32x1xf32> to vector<32x256xf32>
    %6 = arith.addf %3, %5 : vector<32x256xf32>
    %cst_7 = arith.constant 0.000000e+00 : f32
    %7 = vector.broadcast %cst_7 : f32 to vector<32x256xf32>
    %8 = arith.cmpf oge, %6, %7 : vector<32x256xf32>
    %cst_8 = arith.constant 2.000000e-01 : f32
    %9 = vector.broadcast %cst_8 : f32 to vector<32x256xf32>
    %10 = arith.mulf %9, %6 : vector<32x256xf32>
    %11 = arith.select %8, %6, %10 : vector<32x256xi1>, vector<32x256xf32>
    %cst_9 = arith.constant dense<0.000000e+00> : vector<256xf32>
    %12 = vector.multi_reduction <add>, %11, %cst_9 [0] : vector<32x256xf32> to vector<256xf32>
    %13 = vector.shape_cast %12 : vector<256xf32> to vector<1x256xf32>
    %cst_10 = arith.constant 3.200000e+01 : f32
    %14 = vector.broadcast %cst_10 : f32 to vector<1x256xf32>
    %15 = arith.divf %13, %14 : vector<1x256xf32>
    %16 = vector.broadcast %15 : vector<1x256xf32> to vector<32x256xf32>
    %17 = arith.subf %11, %16 : vector<32x256xf32>
    %18 = arith.mulf %17, %17 : vector<32x256xf32>
    %cst_11 = arith.constant dense<0.000000e+00> : vector<256xf32>
    %19 = vector.multi_reduction <add>, %18, %cst_11 [0] : vector<32x256xf32> to vector<256xf32>
    %20 = vector.shape_cast %19 : vector<256xf32> to vector<1x256xf32>
    %cst_12 = arith.constant 3.200000e+01 : f32
    %21 = vector.broadcast %cst_12 : f32 to vector<1x256xf32>
    %22 = arith.divf %20, %21 : vector<1x256xf32>
    %23 = vector.broadcast %15 : vector<1x256xf32> to vector<32x256xf32>
    %24 = arith.subf %11, %23 : vector<32x256xf32>
    %cst_13 = arith.constant 9.99999974E-6 : f32
    %25 = vector.broadcast %cst_13 : f32 to vector<1x256xf32>
    %26 = arith.addf %22, %25 : vector<1x256xf32>
    %27 = math.rsqrt %26 : vector<1x256xf32>
    %28 = vector.broadcast %27 : vector<1x256xf32> to vector<32x256xf32>
    %29 = arith.mulf %24, %28 : vector<32x256xf32>
    %c0_14 = arith.constant 0 : index
    %c0_15 = arith.constant 0 : index
    %30 = vector.load %arg5[%c0_14, %c0_15] : memref<32x1xf32, #tpu.memory_space<vmem>>, vector<32x1xf32>
    %31 = vector.broadcast %30 : vector<32x1xf32> to vector<32x256xf32>
    %32 = arith.mulf %29, %31 : vector<32x256xf32>
    %c0_16 = arith.constant 0 : index
    %c0_17 = arith.constant 0 : index
    %33 = vector.load %arg6[%c0_16, %c0_17] : memref<32x1xf32, #tpu.memory_space<vmem>>, vector<32x1xf32>
    %34 = vector.broadcast %33 : vector<32x1xf32> to vector<32x256xf32>
    %35 = arith.addf %32, %34 : vector<32x256xf32>
    %c0_18 = arith.constant 0 : index
    %c0_19 = arith.constant 0 : index
    %36 = vector.load %arg7[%c0_18, %c0_19] : memref<8x32xf32, #tpu.memory_space<vmem>>, vector<8x32xf32>
    %cst_20 = arith.constant dense<0.000000e+00> : vector<8x256xf32>
    %37 = tpu.matmul %36, %35, %cst_20 {dimension_numbers = #tpu.dot_dimension_numbers<[1], [0], [0], [1], [0, 0, 1, 1], [], []>} : vector<8x32xf32>, vector<32x256xf32>, vector<8x256xf32> -> vector<8x256xf32>
    %c0_21 = arith.constant 0 : index
    %c0_22 = arith.constant 0 : index
    %38 = vector.load %arg8[%c0_21, %c0_22] : memref<8x1xf32, #tpu.memory_space<vmem>>, vector<8x1xf32>
    %39 = vector.broadcast %38 : vector<8x1xf32> to vector<8x256xf32>
    %40 = arith.addf %37, %39 : vector<8x256xf32>
    %cst_23 = arith.constant 0.000000e+00 : f32
    %41 = vector.broadcast %cst_23 : f32 to vector<8x256xf32>
    %42 = arith.cmpf oge, %40, %41 : vector<8x256xf32>
    %cst_24 = arith.constant 2.000000e-01 : f32
    %43 = vector.broadcast %cst_24 : f32 to vector<8x256xf32>
    %44 = arith.mulf %43, %40 : vector<8x256xf32>
    %45 = arith.select %42, %40, %44 : vector<8x256xi1>, vector<8x256xf32>
    %c0_25 = arith.constant 0 : index
    %c0_26 = arith.constant 0 : index
    %46 = vector.load %arg9[%c0_25, %c0_26] : memref<32x32xf32, #tpu.memory_space<vmem>>, vector<32x32xf32>
    %cst_27 = arith.constant dense<0.000000e+00> : vector<32x256xf32>
    %47 = tpu.matmul %46, %35, %cst_27 {dimension_numbers = #tpu.dot_dimension_numbers<[1], [0], [0], [1], [0, 0, 1, 1], [], []>} : vector<32x32xf32>, vector<32x256xf32>, vector<32x256xf32> -> vector<32x256xf32>
    %c0_28 = arith.constant 0 : index
    %c0_29 = arith.constant 0 : index
    %48 = vector.load %arg10[%c0_28, %c0_29] : memref<32x1xf32, #tpu.memory_space<vmem>>, vector<32x1xf32>
    %49 = vector.broadcast %48 : vector<32x1xf32> to vector<32x256xf32>
    %50 = arith.addf %47, %49 : vector<32x256xf32>
    %cst_30 = arith.constant 0.000000e+00 : f32
    %51 = vector.broadcast %cst_30 : f32 to vector<32x256xf32>
    %52 = arith.cmpf oge, %50, %51 : vector<32x256xf32>
    %cst_31 = arith.constant 2.000000e-01 : f32
    %53 = vector.broadcast %cst_31 : f32 to vector<32x256xf32>
    %54 = arith.mulf %53, %50 : vector<32x256xf32>
    %55 = arith.select %52, %50, %54 : vector<32x256xi1>, vector<32x256xf32>
    %56 = tpu.iota {dimensions = array<i32: 0>} : vector<8x1xi32>
    %c4_i32 = arith.constant 4 : i32
    %57 = vector.broadcast %c4_i32 : i32 to vector<8x1xi32>
    %58 = arith.cmpi slt, %56, %57 : vector<8x1xi32>
    %cst_32 = arith.constant -1.000000e+30 : f32
    %59 = vector.shape_cast %58 : vector<8x1xi1> to vector<8x1xi1>
    %60 = vector.broadcast %59 : vector<8x1xi1> to vector<8x256xi1>
    %61 = vector.broadcast %cst_32 : f32 to vector<8x256xf32>
    %62 = arith.select %60, %45, %61 : vector<8x256xi1>, vector<8x256xf32>
    %cst_33 = arith.constant dense<0xFF800000> : vector<256xf32>
    %63 = vector.multi_reduction <maximumf>, %62, %cst_33 [0] : vector<8x256xf32> to vector<256xf32>
    %64 = vector.shape_cast %63 : vector<256xf32> to vector<1x256xf32>
    %65 = vector.broadcast %64 : vector<1x256xf32> to vector<8x256xf32>
    %66 = arith.subf %62, %65 : vector<8x256xf32>
    %67 = math.exp %66 : vector<8x256xf32>
    %cst_34 = arith.constant dense<0.000000e+00> : vector<256xf32>
    %68 = vector.multi_reduction <add>, %67, %cst_34 [0] : vector<8x256xf32> to vector<256xf32>
    %69 = vector.shape_cast %68 : vector<256xf32> to vector<1x256xf32>
    %70 = math.log %69 : vector<1x256xf32>
    %71 = arith.addf %64, %70 : vector<1x256xf32>
    %72 = vector.broadcast %71 : vector<1x256xf32> to vector<8x256xf32>
    %73 = arith.subf %62, %72 : vector<8x256xf32>
    %74 = tpu.concatenate %1, %1, %1, %1 in 0 : vector<8x256xf32>, vector<8x256xf32>, vector<8x256xf32>, vector<8x256xf32> -> vector<32x256xf32>
    %75 = arith.subf %74, %55 : vector<32x256xf32>
    %c0_35 = arith.constant 0 : index
    %c0_36 = arith.constant 0 : index
    %76 = vector.load %arg11[%c0_35, %c0_36] : memref<32x1xf32, #tpu.memory_space<vmem>>, vector<32x1xf32>
    %77 = vector.broadcast %76 : vector<32x1xf32> to vector<32x256xf32>
    %78 = arith.mulf %75, %77 : vector<32x256xf32>
    %c0_37 = arith.constant 0 : index
    %c0_38 = arith.constant 0 : index
    %79 = vector.load %arg13[%c0_37, %c0_38] : memref<8x32xf32, #tpu.memory_space<vmem>>, vector<8x32xf32>
    %80 = arith.mulf %78, %78 : vector<32x256xf32>
    %cst_39 = arith.constant dense<0.000000e+00> : vector<8x256xf32>
    %81 = tpu.matmul %79, %80, %cst_39 {dimension_numbers = #tpu.dot_dimension_numbers<[1], [0], [0], [1], [0, 0, 1, 1], [], []>} : vector<8x32xf32>, vector<32x256xf32>, vector<8x256xf32> -> vector<8x256xf32>
    %cst_40 = arith.constant -7.35150814 : f32
    %82 = vector.broadcast %cst_40 : f32 to vector<8x256xf32>
    %83 = arith.addf %82, %73 : vector<8x256xf32>
    %cst_41 = arith.constant 5.000000e-01 : f32
    %84 = vector.broadcast %cst_41 : f32 to vector<8x256xf32>
    %85 = arith.mulf %84, %81 : vector<8x256xf32>
    %86 = arith.subf %83, %85 : vector<8x256xf32>
    %c0_42 = arith.constant 0 : index
    %c0_43 = arith.constant 0 : index
    %87 = vector.load %arg12[%c0_42, %c0_43] : memref<8x1xf32, #tpu.memory_space<vmem>>, vector<8x1xf32>
    %88 = vector.broadcast %87 : vector<8x1xf32> to vector<8x256xf32>
    %89 = arith.subf %86, %88 : vector<8x256xf32>
    %cst_44 = arith.constant dense<0xFF800000> : vector<256xf32>
    %90 = vector.multi_reduction <maximumf>, %89, %cst_44 [0] : vector<8x256xf32> to vector<256xf32>
    %91 = vector.shape_cast %90 : vector<256xf32> to vector<1x256xf32>
    %92 = vector.broadcast %91 : vector<1x256xf32> to vector<8x256xf32>
    %93 = arith.subf %89, %92 : vector<8x256xf32>
    %94 = math.exp %93 : vector<8x256xf32>
    %cst_45 = arith.constant dense<0.000000e+00> : vector<256xf32>
    %95 = vector.multi_reduction <add>, %94, %cst_45 [0] : vector<8x256xf32> to vector<256xf32>
    %96 = vector.shape_cast %95 : vector<256xf32> to vector<1x256xf32>
    %97 = math.log %96 : vector<1x256xf32>
    %98 = arith.addf %91, %97 : vector<1x256xf32>
    %c0_46 = arith.constant 0 : index
    %c0_47 = arith.constant 0 : index
    %99 = vector.load %arg14[%c0_46, %c0_47] : memref<1x256xf32, #tpu.memory_space<vmem>>, vector<1x256xf32>
    tpu.vector_store %arg14[%c0_46, %c0_47], %98 {strides = array<i32>} : memref<1x256xf32, #tpu.memory_space<vmem>>, vector<1x256xf32>,
    return
  }
  func.func @transform_0(%arg0: i32) -> (i32, i32) {
    %c0_i32 = arith.constant 0 : i32
    %c0_i32_0 = arith.constant 0 : i32
    return %c0_i32, %arg0 : i32, i32
  }
  func.func @transform_1(%arg0: i32) -> (i32, i32) {
    %c0_i32 = arith.constant 0 : i32
    %c0_i32_0 = arith.constant 0 : i32
    return %c0_i32, %arg0 : i32, i32
  }
  func.func @transform_2(%arg0: i32) -> (i32, i32) {
    %c0_i32 = arith.constant 0 : i32
    %c0_i32_0 = arith.constant 0 : i32
    %c0_i32_1 = arith.constant 0 : i32
    return %c0_i32, %c0_i32_0 : i32, i32
  }
  func.func @transform_3(%arg0: i32) -> (i32, i32) {
    %c0_i32 = arith.constant 0 : i32
    %c0_i32_0 = arith.constant 0 : i32
    %c0_i32_1 = arith.constant 0 : i32
    return %c0_i32, %c0_i32_0 : i32, i32
  }
  func.func @transform_4(%arg0: i32) -> (i32, i32) {
    %c0_i32 = arith.constant 0 : i32
    %c0_i32_0 = arith.constant 0 : i32
    %c0_i32_1 = arith.constant 0 : i32
    return %c0_i32, %c0_i32_0 : i32, i32
  }
  func.func @transform_5(%arg0: i32) -> (i32, i32) {
    %c0_i32 = arith.constant 0 : i32
    %c0_i32_0 = arith.constant 0 : i32
    %c0_i32_1 = arith.constant 0 : i32
    return %c0_i32, %c0_i32_0 : i32, i32
  }
  func.func @transform_6(%arg0: i32) -> (i32, i32) {
    %c0_i32 = arith.constant 0 : i32
    %c0_i32_0 = arith.constant 0 : i32
    %c0_i32_1 = arith.constant 0 : i32
    return %c0_i32, %c0_i32_0 : i32, i32
  }
  func.func @transform_7(%arg0: i32) -> (i32, i32) {
    %c0_i32 = arith.constant 0 : i32
    %c0_i32_0 = arith.constant 0 : i32
    %c0_i32_1 = arith.constant 0 : i32
    return %c0_i32, %c0_i32_0 : i32, i32
  }
  func.func @transform_8(%arg0: i32) -> (i32, i32) {
    %c0_i32 = arith.constant 0 : i32
    %c0_i32_0 = arith.constant 0 : i32
    %c0_i32_1 = arith.constant 0 : i32
    return %c0_i32, %c0_i32_0 : i32, i32
  }
  func.func @transform_9(%arg0: i32) -> (i32, i32) {
    %c0_i32 = arith.constant 0 : i32
    %c0_i32_0 = arith.constant 0 : i32
    %c0_i32_1 = arith.constant 0 : i32
    return %c0_i32, %c0_i32_0 : i32, i32
  }
  func.func @transform_10(%arg0: i32) -> (i32, i32) {
    %c0_i32 = arith.constant 0 : i32
    %c0_i32_0 = arith.constant 0 : i32
    %c0_i32_1 = arith.constant 0 : i32
    return %c0_i32, %c0_i32_0 : i32, i32
  }
  func.func @transform_11(%arg0: i32) -> (i32, i32) {
    %c0_i32 = arith.constant 0 : i32
    %c0_i32_0 = arith.constant 0 : i32
    %c0_i32_1 = arith.constant 0 : i32
    return %c0_i32, %c0_i32_0 : i32, i32
  }
  func.func @transform_12(%arg0: i32) -> (i32, i32) {
    %c0_i32 = arith.constant 0 : i32
    %c0_i32_0 = arith.constant 0 : i32
    %c0_i32_1 = arith.constant 0 : i32
    return %c0_i32, %c0_i32_0 : i32, i32
  }
  func.func @transform_13(%arg0: i32) -> (i32, i32) {
    %c0_i32 = arith.constant 0 : i32
    %c0_i32_0 = arith.constant 0 : i32
    return %c0_i32, %arg0 : i32, i32
  }
}

</mosaic_0001>

<bundles_post_ra>
// kernel: tpu_custom_call.1
= control target key start
LH: loop header
LB: loop body
LE: loop exit
PB: predicated region body
PF: predicated region fallthrough
CT: control target
= control target key end

     0   :  { %s1989_s0 = inlined_call_operand.vmem [shape: f32[8,512], index: 0, kind: input, shape index: {}]   ;;  %s1990_s1 = inlined_call_operand.vmem [shape: f32[32,512], index: 1, kind: input, shape index: {}]   ;;  %s1991_s2 = inlined_call_operand.hbm [shape: f32[32,32], index: 2, kind: input, shape index: {}]   ;;  %s1992_s3 = inlined_call_operand.vmem [shape: f32[32,1], index: 3, kind: input, shape index: {}]   ;;  %s1993_s4 = inlined_call_operand.vmem [shape: f32[32,1], index: 4, kind: input, shape index: {}]   ;;  %s1994_s5 = inlined_call_operand.vmem [shape: f32[32,1], index: 5, kind: input, shape index: {}]   ;;  %s1995_s6 = inlined_call_operand.vmem [shape: f32[8,32], index: 6, kind: input, shape index: {}]   ;;  %s1996_s7 = inlined_call_operand.vmem [shape: f32[8,1], index: 7, kind: input, shape index: {}]   ;;  %s1997_s8 = inlined_call_operand.vmem [shape: f32[32,32], index: 8, kind: input, shape index: {}]   ;;  %s1998_s9 = inlined_call_operand.vmem [shape: f32[32,1], index: 9, kind: input, shape index: {}]   ;;  %s1999_s10 = inlined_call_operand.vmem [shape: f32[32,1], index: 10, kind: input, shape index: {}]   ;;  %s2000_s11 = inlined_call_operand.vmem [shape: f32[8,1], index: 11, kind: input, shape index: {}]   ;;  %s2001_s12 = inlined_call_operand.vmem [shape: f32[8,32], index: 12, kind: input, shape index: {}]   ;;  %s2002_s13 = inlined_call_operand.hbm [shape: f32[1,512], index: 13, kind: output, shape index: {}]  }
   0x1   :  { %2011 = sst [smem:[#allocation13_spill]] %s2002_s13 }
   0x2   :  { %18 = vsyncpa [#allocation4], 0 }
   0x3   :  { %19 = vsyncpa [#allocation5], 0 }
   0x4   :  { %21 = vsyncpa [#allocation5 + $0x1], 0  ;;  %s1706_s25 = smov 0   ;;  %s1708_s26 = smov 0  }
   0x5   :  { %s1710_s27 = smov 0   ;;  %s1712_s28 = smov 0  }
   0x6 LB: > { %2012 = sst [smem:[#allocation9_spill]] %s1615_s25  ;;  %s1727_s29 = sadd.s32 4294967295, %s1627_s28   ;;  %s1627_s28 = sphi %s1712_s28, %s2030_s28   ;;  %s1623_s27 = sphi %s1710_s27, %s2034_s27   ;;  %s1619_s26 = sphi %s1708_s26, %s2033_s26   ;;  %s1615_s25 = sphi %s1706_s25, %s2032_s25  }
   0x7   : > { %s1394_s30 = sadd.s32 4294967294, %s1627_s28   ;;  %s1731_s14 = sadd.s32 1, %s1627_s28  }
   0x8   : > { %2013 = sst [smem:[#allocation10_spill]] %s1731_s14  ;;  %s60_s15 = sadd.s32 1, %s1623_s27 }
   0x9   : > { %s57_s16 = ssub.s32 %s1627_s28, %s1731_s14  ;;  %p67_p0 = scmp.ne.s32.totalorder %s1623_s27, %s1619_s26 }
   0xa   : > { %p58_p1 = scmp.eq.s32.totalorder %s57_s16, 0  ;;  %p68_p2 = scmp.eq.s32.totalorder %s1627_s28, 0 }
   0xb   : > { %p328_p3 = scmp.eq.s32.totalorder %s1727_s29, 1  ;;  %p333_p4 = scmp.ne.s32.totalorder %s1619_s26, %s1615_s25 }
   0xc   : > { %s1743_s17 = scalar_select %p58_p1, %s1623_s27, %s60_s15  }
   0xd   : > { %p1745_p5 = por %p68_p2, %p67_p0  ;;  %p1749_p6 = por %p328_p3, %p67_p0 }
   0xe   : > { %2014 = sst [smem:[#allocation11_spill]] %s1743_s17  ;;  %p334_p7 = scmp.eq.s32.totalorder %s1394_s30, 1 }
   0xf   : > { %s2015_s18 = scalar_select %p1745_p5, 1, 0 }
  0x10   : > { %s2016_s19 = scalar_select %p1749_p6, 1, 0 }
  0x11   : > { %p1395_p8 = scmp.ge.s32.totalorder %s1627_s28, 1  ;;  %p341_p9 = scmp.lt.s32.totalorder %s1627_s28, 3 }
  0x12   : > { %p1755_p10 = por %p334_p7, %p333_p4  ;;  %p2007_p11 = scmp.eq.s32.totalorder %s1727_s29, 0 }
  0x13   : > { %p1760_p12 = pnand %p1395_p8, %p341_p9  ;;  %s1629_s22 = smov [#allocation3]  }
  0x14   : > { %s2017_s20 = scalar_select %p1755_p10, 1, 0 }
  0x15   : > { %s2019_s21 = scalar_select %p1760_p12, 1, 0 }
  0x16   : > { %2018 = sst [smem:[#allocation12_spill]] %s2017_s20  ;;  %s353_s23 = sshll.u32 %s1629_s22, 4  ;;  %s354_s23 = int_to_ptr.vmem [resolvable:$true] %s353_s23 }
  0x17   : > { %p1462_p13 = pneg %p1760_p12  ;;  %s1533_s16 = scalar_lea.hbm %s1991_s2, 512 }
  0x18   : > { %p1534_p1 = scmp.ne.s32.totalorder %s1991_s2, %s1533_s16  ;;  %p1540_p7 = scmp.lt.u32.totalorder %s1533_s16, %s1991_s2 }
  0x19   : > { %p1768_p0 = pnand %p2007_p11, %p1462_p13 }
  0x1b   : > { %p1535_p2 = pneg %p1768_p0 }
  0x1d   : > { %p1536_p3 = pnand %p1535_p2, %p1534_p1 }
  0x1f   : > { %p1537_p4 = pneg %p1536_p3 }
  0x21   : > { %p1542_p8 = pnand %p1540_p7, %p1537_p4 }
  0x23   : > { %1545 = shalt.err (!%p1542_p8)
}
  0x24   : > { %s1546_s25 = scalar_lea.vmem %s354_s23, 512  ;;  %p1554_p10 = scmp.lt.s32.totalorder %s354_s23, %s354_s23 }
  0x25   : > { %p1547_p9 = scmp.ne.s32.totalorder %s354_s23, %s1546_s25  ;;  %p1555_p6 = scmp.lt.s32.totalorder %s1546_s25, %s1546_s25 }
  0x27   : > { %p1549_p13 = pnand %p1547_p9, %p1535_p2  ;;  %p1556_p12 = por %p1555_p6, %p1554_p10 }
  0x29   : > { %p1550_p11 = pneg %p1549_p13 }
  0x2b   : > { %p1557_p5 = pnand %p1556_p12, %p1550_p11 }
  0x2d   : > { %1560 = shalt.err (!%p1557_p5)
}
  0x2e   : > { %s1630_s14 = smov 128   ;;  %s1631_s17 = smov 8  }
  0x2f   : > { %1465 = dma.hbm_to_vmem [thread:$0]  (!%p1768_p0), %s1991_s2, 512, %s354_s23, [#allocation4], %s1630_s14, %s1630_s14, %s1631_s17  }
  0x30   : > { %p1397_p1 = scmp.ge.s32.totalorder %s1627_s28, 2 }
  0x31   : > { %p2021_p2 = scmp.ne.s32.totalorder (!%p1397_p1), %s2015_s18, 0 }
  0x32   : > { %393 = sbr.rel (%p1397_p1) target bundleno = 65 (0x41), region = 60 }
  0x39   : > { %405 = sbr.rel (!%p2021_p2) target bundleno = 65 (0x41), region = 68  ;;  %s407_s25 = sand.u32 (%p2021_p2), 1, %s1623_s27  }
  0x3a   : > { %s1422_s20 = sshll.u32 (%p2021_p2), %s1627_s28, 4  ;;  %s1398_s16 = sshll.u32 (%p2021_p2), %s407_s25, 6 }
  0x3b   : > { %s412_s24 = scalar_lea.vmem (%p2021_p2), %s1990_s1, %s1422_s20  ;;  %s409_s23 = scalar_lea.vmem (%p2021_p2), [#allocation2], %s1398_s16 }
  0x3c   : > { %v425_v0 = vld [vmem:[%s412_s24] sm:$0xff] (%p2021_p2)  ;;  %v427_v1 = vld [vmem:[%s412_s24 + $0x8] sm:$0xff] (%p2021_p2) }
  0x3d   : > { %v429_v2 = vld [vmem:[%s412_s24 + $0x20] sm:$0xff] (%p2021_p2)  ;;  %426 = vst [vmem:[%s409_s23] sm:$0xff] (%p2021_p2), %v425_v0  ;;  %428 = vst [vmem:[%s409_s23 + $0x8] sm:$0xff] (%p2021_p2), %v427_v1  ;;  %v431_v3 = vld [vmem:[%s412_s24 + $0x28] sm:$0xff] (%p2021_p2) }
  0x3e   : > { %430 = vst [vmem:[%s409_s23 + $0x10] sm:$0xff] (%p2021_p2), %v429_v2  ;;  %v433_v4 = vld [vmem:[%s412_s24 + $0x40] sm:$0xff] (%p2021_p2)  ;;  %v435_v5 = vld [vmem:[%s412_s24 + $0x48] sm:$0xff] (%p2021_p2)  ;;  %432 = vst [vmem:[%s409_s23 + $0x18] sm:$0xff] (%p2021_p2), %v431_v3 }
  0x3f   : > { %434 = vst [vmem:[%s409_s23 + $0x20] sm:$0xff] (%p2021_p2), %v433_v4  ;;  %436 = vst [vmem:[%s409_s23 + $0x28] sm:$0xff] (%p2021_p2), %v435_v5  ;;  %v437_v6 = vld [vmem:[%s412_s24 + $0x60] sm:$0xff] (%p2021_p2)  ;;  %v439_v7 = vld [vmem:[%s412_s24 + $0x68] sm:$0xff] (%p2021_p2) }
  0x40   : > { %438 = vst [vmem:[%s409_s23 + $0x30] sm:$0xff] %v437_v6  ;;  %440 = vst [vmem:[%s409_s23 + $0x38] sm:$0xff] %v439_v7 }
  0x41 PF: > { %p2022_p5 = scmp.ne.s32.totalorder %s2019_s21, 0 }
  0x42   : > { %s1801_s13 = sand.u32 (!%p2022_p5), 1, %s1619_s26   ;;  %p2023_p6 = scmp.eq.s32.totalorder (!%p2022_p5), %s1727_s29, 0 }
  0x43   : > { %449 = sbr.rel (%p2022_p5) target bundleno = 928 (0x3a0), region = 91  ;;  %s1402_s18 = sshll.u32 (!%p2022_p5), %s1801_s13, 6 }
  0x44   : > { %s454_s14 = scalar_lea.vmem (!%p2022_p5), [#allocation2], %s1402_s18 }
  0x4a   : > { %1606 = dma.done.wait (%p2023_p6), [#allocation4], 512   ;;  %p2024_p10 = pmov %p2023_p6 }
  0x4b   : > { %v1632_v8 = vmov 0.0   ;;  %v1633_v9 = vmov 0   ;;  %v513_v10 = vld [vmem:[%s454_s14 + $0x8] sm:$0xff]  ;;  %v515_v11 = vld [vmem:[%s454_s14 + $0x18] sm:$0xff]  ;;  %v512_v12 = vld [vmem:[%s454_s14] sm:$0xff]  ;;  %vm550_vm0 = vcmask 261120  }
  0x4c   : > { %1608 = vsyncadd (%p2024_p10), [#allocation4], 4294966784  ;;  %627 = vmatprep.mubr.f32.mxu0 %v1632_v8  ;;  %1511 = vset.pattern.permute.xlu0 %v1633_v9  ;;  %v1424_v13 = vpack.c.bf16 %v515_v11, %v513_v10  ;;  %v514_v14 = vld [vmem:[%s454_s14 + $0x10] sm:$0xff]  ;;  %v517_v15 = vld [vmem:[%s454_s14 + $0x28] sm:$0xff]  ;;  %s1405_s16 = sshll.u32 %s1727_s29, 1  ;;  %s1404_s17 = sshll.u32 %s1801_s13, 1 }
  0x4d   : > { %1512 = vset.pattern.permute.xlu1 %v1633_v9  ;;  %883 = vmatprep.mubr.f32.mxu1 %v1632_v8  ;;  %v519_v16 = vld [vmem:[%s454_s14 + $0x38] sm:$0xff]  ;;  %v1426_v17 = vpack.c.bf16 %v514_v14, %v512_v12  ;;  %v516_v19 = vld [vmem:[%s454_s14 + $0x20] sm:$0xff]  ;;  %v518_v20 = vld [vmem:[%s454_s14 + $0x30] sm:$0xff]  ;;  %p505_p11 = scmp.lt.s32.totalorder %s1405_s16, 3  ;;  %s1423_s30 = sshll.u32 %s1727_s29, 5 }
  0x4e   : > { %v1428_v18 = vpack.c.bf16 %v519_v16, %v517_v15  ;;  %1425 = vmatprep.subr.bf16.mxu0 %v1424_v13  ;;  %v1430_v21 = vpack.c.bf16 %v518_v20, %v516_v19  ;;  %v526_v22 = vld [vmem:[%s1992_s3] sm:$0xff]  ;;  %v528_v23 = vld [vmem:[%s1992_s3 + $0x10] sm:$0xff]  ;;  %v527_v24 = vld [vmem:[%s1992_s3 + $0x8] sm:$0xff]  ;;  %s503_s15 = scalar_lea.vmem [#allocation6], %s1404_s17  ;;  %s1291_s23 = scalar_lea.sflag [#allocation5], %s1801_s13 }
  0x4f   : > { %1427 = vmatpush1.bf16.msra.mxu0 %v1426_v17  ;;  %532 = vperm.xlu0 %1511, %v526_v22   ;;  %v529_v25 = vld [vmem:[%s1992_s3 + $0x18] sm:$0xff]  ;;  %v522_v26 = vld [vmem:[#allocation3] sm:$0xff]  ;;  %v746_v28 = vld [vmem:[%s1993_s4 + $0x8] sm:$0xff]  ;;  %s2036_s16 = smov (!%p505_p11, %s1405_s16), 3  ;;  %s1305_s25 = sshll.u32 %s503_s15, 4  ;;  %s1947_s25 = int_to_ptr.vmem [resolvable:$true] %s1305_s25 }
  0x50   : > { %1429 = vmatprep.subr.bf16.mxu0 %v1428_v18  ;;  %542 = vperm.xlu1 %1512, %v528_v23   ;;  %v745_v27 = vld [vmem:[%s1993_s4] sm:$0xff]  ;;  %v523_v29 = vld [vmem:[#allocation3 + $0x8] sm:$0xff]  ;;  %v524_v32 = vld [vmem:[#allocation3 + $0x10] sm:$0xff]  ;;  %s1406_s22 = sshll.u32 %s2036_s16, 3  ;;  %p2026_p0 = scmp.ne.s32.totalorder %s2016_s19, 0 }
  0x51   : > { %v777_v30 = vld [vmem:[%s1994_s5] sm:$0xff]  ;;  %v778_v31 = vld [vmem:[%s1994_s5 + $0x8] sm:$0xff]  ;;  %v747_v33 = vld [vmem:[%s1993_s4 + $0x10] sm:$0xff]  ;;  %s508_s18 = scalar_lea.vmem %s1989_s0, %s1406_s22  ;;  %s2025_s22 = sld [smem:[#allocation13_spill]] }
  0x52   : > { %v748_v34 = vld [vmem:[%s1993_s4 + $0x18] sm:$0xff]  ;;  %v779_v36 = vld [vmem:[%s1994_s5 + $0x10] sm:$0xff]  ;;  %v900_v38 = vld [vmem:[%s1998_s9] sm:$0xff]  ;;  %s1635_s29 = smov [#allocation6]  }
  0x53   : > { %1431 = vmatpush1.bf16.msra.mxu0 %v1430_v21  ;;  %537 = vperm.xlu0 %1511, %v527_v24   ;;  %v525_v35 = vld [vmem:[#allocation3 + $0x18] sm:$0xff]  ;;  %v901_v39 = vld [vmem:[%s1998_s9 + $0x8] sm:$0xff]  ;;  %v902_v40 = vld [vmem:[%s1998_s9 + $0x10] sm:$0xff]  ;;  %s1565_s14 = sshll.u32 %s1635_s29, 4  ;;  %s1566_s14 = int_to_ptr.vmem [resolvable:$false] %s1565_s14 }
  0x54   : > { %547 = vperm.xlu1 %1512, %v529_v25   ;;  %v780_v37 = vld [vmem:[%s1994_s5 + $0x18] sm:$0xff]  ;;  %v1102_v42 = vld [vmem:[%s1999_s10] sm:$0xff]  ;;  %v1103_v43 = vld [vmem:[%s1999_s10 + $0x8] sm:$0xff]  ;;  %s1567_s21 = scalar_lea.vmem %s1566_s14, 64  ;;  %p1568_p7 = scmp.lt.s32.totalorder %s1947_s25, %s1566_s14 }
  0x55   : > { %v903_v41 = vld [vmem:[%s1998_s9 + $0x18] sm:$0xff]  ;;  %v1104_v44 = vld [vmem:[%s1999_s10 + $0x10] sm:$0xff]  ;;  %v810_v46 = vld [vmem:[%s1996_s7] sm:$0xff] }
  0x56   : > { %1407 = vmatmul.mubr.msk.f32.vlgmr.msra.gmra.mrb[0].mxu0 %vm550_vm0, %v522_v26  ;;  %v1105_v45 = vld [vmem:[%s1999_s10 + $0x18] sm:$0xff]  ;;  %v1223_v47 = vld [vmem:[%s2000_s11] sm:$0xff] }
  0x57   : > { %633 = vmatprep.mubr.f32.mxu0 %v1632_v8  ;;  %751 = vperm.xlu0 %1511, %v745_v27   ;;  %s1945_s24 = scalar_lea.hbm %s2025_s22, %s1423_s30 }
  0x58   : > { %756 = vperm.xlu1 %1512, %v746_v28  }
  0x5a   : > { %1408 = vmatmul.mubr.msk.f32.gmra.mrb[2].mxu0 %vm550_vm0, %v523_v29 }
  0x5b   : > { %639 = vmatprep.mubr.f32.mxu0 %v1632_v8  ;;  %783 = vperm.xlu0 %1511, %v777_v30  }
  0x5c   : > { %788 = vperm.xlu1 %1512, %v778_v31  }
  0x5e   : > { %1409 = vmatmul.mubr.msk.f32.gmra.mrb[4].mxu0 %vm550_vm0, %v524_v32 }
  0x5f   : > { %645 = vmatprep.mubr.f32.mxu0 %v1632_v8  ;;  %761 = vperm.xlu0 %1511, %v747_v33  }
  0x60   : > { %766 = vperm.xlu1 %1512, %v748_v34  }
  0x62   : > { %1410 = vmatmul.mubr.msk.f32.gmra.mrb[6].mxu0 %vm550_vm0, %v525_v35 }
  0x63   : > { %1210 = vmatprep.mubr.f32.mxu0 %v1632_v8  ;;  %793 = vperm.xlu0 %1511, %v779_v36  }
  0x64   : > { %798 = vperm.xlu1 %1512, %v780_v37  }
  0x67   : > { %906 = vperm.xlu0 %1511, %v900_v38  }
  0x68   : > { %911 = vperm.xlu1 %1512, %v901_v39  }
  0x6b   : > { %916 = vperm.xlu0 %1511, %v902_v40  }
  0x6c   : > { %921 = vperm.xlu1 %1512, %v903_v41  }
  0x6f   : > { %1108 = vperm.xlu0 %1511, %v1102_v42  }
  0x70   : > { %1113 = vperm.xlu1 %1512, %v1103_v43  }
  0x73   : > { %1118 = vperm.xlu0 %1511, %v1104_v44  }
  0x74   : > { %1123 = vperm.xlu1 %1512, %v1105_v45  }
  0x77   : > { %813 = vperm.xlu0 %1511, %v810_v46  }
  0x78   : > { %1226 = vperm.xlu1 %1512, %v1223_v47  }
  0xce   : > { %v533_v48 = vpop.permute.xlu0 %532 }
  0xcf   : > { %v543_v58 = vpop.permute.xlu1 %542 }
  0xd2   : > { %v538_v53 = vpop.permute.xlu0 %537 }
  0xd3   : > { %v548_v11 = vpop.permute.xlu1 %547 }
 0x129   : > { %v629_v49 = vpop.f32.mrb[0].mxu0 }
 0x12a   : > { %v630_v50 = vadd.f32 %v629_v49, %v533_v48  ;;  %v631_v51 = vpop.f32.mrb[1].mxu0 }
 0x12b   : > { %v632_v52 = vadd.f32 %v631_v51, %v533_v48 }
 0x12c   : > { %v660_v55 = vmul.f32 0.2, %v630_v50  ;;  %vm652_vm1 = vcmp.ge.f32.partialorder %v630_v50, 0.0 }
 0x12d   : > { %v635_v54 = vpop.f32.mrb[2].mxu0  ;;  %v661_v59 = vmul.f32 0.2, %v632_v52  ;;  %vm653_vm2 = vcmp.ge.f32.partialorder %v632_v52, 0.0 }
 0x12e   : > { %v636_v56 = vadd.f32 %v635_v54, %v538_v53  ;;  %v637_v57 = vpop.f32.mrb[3].mxu0  ;;  %v668_v0 = vsel %vm652_vm1, %v630_v50, %v660_v55 }
 0x12f   : > { %v638_v60 = vadd.f32 %v637_v57, %v538_v53  ;;  %v669_v4 = vsel %vm653_vm2, %v632_v52, %v661_v59 }
 0x130   : > { %vm654_vm3 = vcmp.ge.f32.partialorder %v636_v56, 0.0  ;;  %v662_v61 = vmul.f32 0.2, %v636_v56 }
 0x131   : > { %vm655_vm4 = vcmp.ge.f32.partialorder %v638_v60, 0.0  ;;  %v663_v62 = vmul.f32 0.2, %v638_v60  ;;  %v641_v63 = vpop.f32.mrb[4].mxu0 }
 0x132   : > { %v670_v1 = vsel %vm654_vm3, %v636_v56, %v662_v61  ;;  %v642_v2 = vadd.f32 %v641_v63, %v543_v58  ;;  %v643_v3 = vpop.f32.mrb[5].mxu0 }
 0x133   : > { %v676_v5 = vadd.f32 %v670_v1, %v668_v0  ;;  %v671_v6 = vsel %vm655_vm4, %v638_v60, %v663_v62  ;;  %v644_v7 = vadd.f32 %v643_v3, %v543_v58 }
 0x134   : > { %v685_v9 = vadd.f32 %v671_v6, %v669_v4  ;;  %vm656_vm5 = vcmp.ge.f32.partialorder %v642_v2, 0.0  ;;  %v664_v10 = vmul.f32 0.2, %v642_v2 }
 0x135   : > { %vm657_vm6 = vcmp.ge.f32.partialorder %v644_v7, 0.0  ;;  %v665_v12 = vmul.f32 0.2, %v644_v7  ;;  %v647_v13 = vpop.f32.mrb[6].mxu0 }
 0x136   : > { %v672_v14 = vsel %vm656_vm5, %v642_v2, %v664_v10  ;;  %v648_v15 = vadd.f32 %v647_v13, %v548_v11  ;;  %v649_v16 = vpop.f32.mrb[7].mxu0  ;;  %v757_v13 = vpop.permute.xlu1 %756 }
 0x137   : > { %v677_v17 = vadd.f32 %v676_v5, %v672_v14  ;;  %v673_v18 = vsel %vm657_vm6, %v644_v7, %v665_v12  ;;  %v650_v19 = vadd.f32 %v649_v16, %v548_v11  ;;  %v752_v12 = vpop.permute.xlu0 %751 }
 0x138   : > { %v686_v20 = vadd.f32 %v685_v9, %v673_v18  ;;  %vm658_vm7 = vcmp.ge.f32.partialorder %v648_v15, 0.0  ;;  %v666_v21 = vmul.f32 0.2, %v648_v15 }
 0x139   : > { %vm659_vm8 = vcmp.ge.f32.partialorder %v650_v19, 0.0  ;;  %v667_v22 = vmul.f32 0.2, %v650_v19 }
 0x13a   : > { %v674_v23 = vsel %vm658_vm7, %v648_v15, %v666_v21 }
 0x13b   : > { %v678_v24 = vadd.f32 %v677_v17, %v674_v23  ;;  %v675_v25 = vsel %vm659_vm8, %v650_v19, %v667_v22  ;;  %v789_v19 = vpop.permute.xlu1 %788 }
 0x13c   : > { %v687_v26 = vadd.f32 %v686_v20, %v675_v25 }
 0x13d   : > { %v679_v27 = vrot.slane %v678_v24, 4 }
 0x13e   : > { %v688_v28 = vrot.slane %v687_v26, 4 }
 0x13f   : > { %v680_v29 = vadd.f32 %v679_v27, %v678_v24  ;;  %v767_v21 = vpop.permute.xlu1 %766 }
 0x140   : > { %v689_v30 = vadd.f32 %v688_v28, %v687_v26 }
 0x141   : > { %v681_v31 = vrot.slane %v680_v29, 2 }
 0x142   : > { %v690_v32 = vrot.slane %v689_v30, 2 }
 0x143   : > { %v682_v33 = vadd.f32 %v681_v31, %v680_v29 }
 0x144   : > { %v691_v34 = vadd.f32 %v690_v32, %v689_v30 }
 0x145   : > { %v683_v35 = vrot.slane %v682_v33, 1 }
 0x146   : > { %v692_v36 = vrot.slane %v691_v34, 1 }
 0x147   : > { %v684_v37 = vadd.f32 %v683_v35, %v682_v33 }
 0x148   : > { %v693_v38 = vadd.f32 %v692_v36, %v691_v34 }
 0x149   : > { %v695_v39 = vmul.f32 0.03125, %v684_v37  ;;  %v799_v37 = vpop.permute.xlu1 %798 }
 0x14a   : > { %v696_v40 = vmul.f32 0.03125, %v693_v38 }
 0x14b   : > { %v697_v41 = vsub.f32 %v668_v0, %v695_v39  ;;  %v699_v42 = vsub.f32 %v670_v1, %v695_v39  ;;  %v701_v43 = vsub.f32 %v672_v14, %v695_v39  ;;  %v703_v44 = vsub.f32 %v674_v23, %v695_v39 }
 0x14c   : > { %v698_v45 = vsub.f32 %v669_v4, %v696_v40  ;;  %v700_v46 = vsub.f32 %v671_v6, %v696_v40  ;;  %v702_v47 = vsub.f32 %v673_v18, %v696_v40  ;;  %v704_v48 = vsub.f32 %v675_v25, %v696_v40  ;;  %v784_v18 = vpop.permute.xlu0 %783 }
 0x14d   : > { %v705_v49 = vmul.f32 %v697_v41, %v697_v41  ;;  %v707_v50 = vmul.f32 %v699_v42, %v699_v42  ;;  %v709_v53 = vmul.f32 %v701_v43, %v701_v43  ;;  %v711_v57 = vmul.f32 %v703_v44, %v703_v44 }
 0x14e   : > { %v706_v51 = vmul.f32 %v698_v45, %v698_v45  ;;  %v708_v52 = vmul.f32 %v700_v46, %v700_v46  ;;  %v710_v55 = vmul.f32 %v702_v47, %v702_v47  ;;  %v712_v59 = vmul.f32 %v704_v48, %v704_v48 }
 0x14f   : > { %v713_v54 = vadd.f32 %v707_v50, %v705_v49 }
 0x150   : > { %v722_v56 = vadd.f32 %v708_v52, %v706_v51  ;;  %v762_v20 = vpop.permute.xlu0 %761 }
 0x151   : > { %v714_v58 = vadd.f32 %v713_v54, %v709_v53  ;;  %v809_v54 = vld [vmem:[%s1995_s6] sm:$0xff] }
 0x152   : > { %v723_v60 = vadd.f32 %v722_v56, %v710_v55  ;;  %v896_v55 = vld [vmem:[%s1997_s8] sm:$0xff]  ;;  %v897_v56 = vld [vmem:[%s1997_s8 + $0x8] sm:$0xff] }
 0x153   : > { %v715_v61 = vadd.f32 %v714_v58, %v711_v57  ;;  %v898_v57 = vld [vmem:[%s1997_s8 + $0x10] sm:$0xff]  ;;  %v899_v58 = vld [vmem:[%s1997_s8 + $0x18] sm:$0xff] }
 0x154   : > { %v724_v62 = vadd.f32 %v723_v60, %v712_v59  ;;  %v794_v36 = vpop.permute.xlu0 %793 }
 0x155   : > { %v716_v63 = vrot.slane %v715_v61, 4 }
 0x156   : > { %v725_v0 = vrot.slane %v724_v62, 4 }
 0x157   : > { %v717_v1 = vadd.f32 %v716_v63, %v715_v61 }
 0x158   : > { %v726_v2 = vadd.f32 %v725_v0, %v724_v62  ;;  %v907_v61 = vpop.permute.xlu0 %906  ;;  %v912_v62 = vpop.permute.xlu1 %911 }
 0x159   : > { %v718_v3 = vrot.slane %v717_v1, 2 }
 0x15a   : > { %v727_v4 = vrot.slane %v726_v2, 2 }
 0x15b   : > { %v719_v5 = vadd.f32 %v718_v3, %v717_v1  ;;  %v1916_v3 = vld [vmem:[%s508_s18] sm:$0xff] }
 0x15c   : > { %v728_v6 = vadd.f32 %v727_v4, %v726_v2  ;;  %v917_v63 = vpop.permute.xlu0 %916 }
 0x15d   : > { %v720_v7 = vrot.slane %v719_v5, 1 }
 0x15e   : > { %v729_v9 = vrot.slane %v728_v6, 1 }
 0x15f   : > { %v721_v10 = vadd.f32 %v720_v7, %v719_v5  ;;  %v1918_v5 = vld [vmem:[%s508_s18 + $0x8] sm:$0xff]  ;;  %s1561_s18 = scalar_lea.vmem %s1947_s25, 32 }
 0x160   : > { %v730_v11 = vadd.f32 %v729_v9, %v728_v6  ;;  %v922_v9 = vpop.permute.xlu1 %921  ;;  %p1562_p12 = scmp.ne.s32.totalorder %s1947_s25, %s1561_s18  ;;  %p1569_p8 = scmp.lt.s32.totalorder %s1567_s21, %s1561_s18 }
 0x161   : > { %v731_v14 = vmul.f32 0.03125, %v721_v10 }
 0x162   : > { %v732_v15 = vmul.f32 0.03125, %v730_v11  ;;  %p1563_p3 = pnand %p1562_p12, %p2026_p0  ;;  %p1570_p9 = por %p1569_p8, %p1568_p7 }
 0x163   : > { %v733_v16 = vadd.f32 1e-05, %v731_v14 }
 0x164   : > { %v734_v17 = vadd.f32 1e-05, %v732_v15  ;;  %p1564_p4 = pneg %p1563_p3 }
 0x165   : > { %1513 = vrsqrt.f32 %v733_v16  ;;  %v1109_v16 = vpop.permute.xlu0 %1108 }
 0x166   : > { %1515 = vrsqrt.f32 %v734_v17  ;;  %p1571_p13 = pnand %p1570_p9, %p1564_p4 }
 0x16f   : > { %v1514_v22 = vpop.eup %1513 }
 0x170   : > { %v1516_v23 = vpop.eup %1515  ;;  %v743_v24 = vmul.f32 %v1514_v22, %v703_v44  ;;  %v737_v25 = vmul.f32 %v1514_v22, %v697_v41  ;;  %v739_v26 = vmul.f32 %v1514_v22, %v699_v42  ;;  %v741_v27 = vmul.f32 %v1514_v22, %v701_v43 }
 0x171   : > { %v744_v28 = vmul.f32 %v1516_v23, %v704_v48  ;;  %v738_v29 = vmul.f32 %v1516_v23, %v698_v45  ;;  %v740_v30 = vmul.f32 %v1516_v23, %v700_v46  ;;  %v742_v31 = vmul.f32 %v1516_v23, %v702_v47 }
 0x172   : > { %v769_v32 = vmul.f32 %v752_v12, %v737_v25  ;;  %v771_v33 = vmul.f32 %v757_v13, %v739_v26  ;;  %v773_v34 = vmul.f32 %v762_v20, %v741_v27  ;;  %v775_v35 = vmul.f32 %v767_v21, %v743_v24 }
 0x173   : > { %v770_v38 = vmul.f32 %v752_v12, %v738_v29  ;;  %v772_v39 = vmul.f32 %v757_v13, %v740_v30  ;;  %v774_v40 = vmul.f32 %v762_v20, %v742_v31  ;;  %v776_v49 = vmul.f32 %v767_v21, %v744_v28  ;;  %v1114_v29 = vpop.permute.xlu1 %1113 }
 0x174   : > { %v801_v50 = vadd.f32 %v784_v18, %v769_v32  ;;  %v803_v51 = vadd.f32 %v789_v19, %v771_v33  ;;  %v805_v44 = vadd.f32 %v794_v36, %v773_v34  ;;  %v807_v41 = vadd.f32 %v799_v37, %v775_v35 }
 0x175   : > { %v802_v42 = vadd.f32 %v784_v18, %v770_v38  ;;  %v804_v43 = vadd.f32 %v789_v19, %v772_v39  ;;  %v806_v48 = vadd.f32 %v794_v36, %v774_v40  ;;  %v808_v45 = vadd.f32 %v799_v37, %v776_v49 }
 0x176   : > { %v1434_v46 = vpack.c.bf16 %v803_v51, %v801_v50  ;;  %v1438_v47 = vpack.c.bf16 %v807_v41, %v805_v44 }
 0x177   : > { %v1432_v52 = vpack.c.bf16 %v804_v43, %v802_v42  ;;  %v1436_v53 = vpack.c.bf16 %v808_v45, %v806_v48 }
 0x179   : > { %1433 = vmatprep.subr.bf16.mxu1 %v1432_v52 }
 0x17a   : > { %1435 = vmatpush1.bf16.msra.mxu1 %v1434_v46 }
 0x17b   : > { %1437 = vmatprep.subr.bf16.mxu1 %v1436_v53 }
 0x17e   : > { %1439 = vmatpush1.bf16.msra.mxu1 %v1438_v47 }
 0x17f   : > { %1441 = vmatprep.subr.bf16.mxu1 %v1432_v52 }
 0x181   : > { %1411 = vmatmul.mubr.msk.f32.vlgmr.msra.gmra.mrb[0].mxu1 %vm550_vm0, %v809_v54 }
 0x182   : > { %1443 = vmatpush1.bf16.msra.mxu1 %v1434_v46  ;;  %1000 = vmatprep.mubr.f32.mxu1 %v1632_v8  ;;  %v1119_v46 = vpop.permute.xlu0 %1118 }
 0x183   : > { %1445 = vmatprep.subr.bf16.mxu1 %v1436_v53 }
 0x186   : > { %1447 = vmatpush1.bf16.msra.mxu1 %v1438_v47 }
 0x189   : > { %1412 = vmatmul.mubr.msk.f32.vlgmr.msra.gmra.mrb[2].mxu1 %vm550_vm0, %v896_v55 }
 0x18a   : > { %1006 = vmatprep.mubr.f32.mxu1 %v1632_v8 }
 0x18d   : > { %1413 = vmatmul.mubr.msk.f32.gmra.mrb[4].mxu1 %vm550_vm0, %v897_v56  ;;  %v1124_v56 = vpop.permute.xlu1 %1123 }
 0x18e   : > { %1012 = vmatprep.mubr.f32.mxu1 %v1632_v8 }
 0x191   : > { %1414 = vmatmul.mubr.msk.f32.gmra.mrb[6].mxu1 %vm550_vm0, %v898_v57 }
 0x192   : > { %1018 = vmatprep.mubr.f32.mxu1 %v1632_v8 }
 0x195   : > { %1415 = vmatmul.mubr.msk.f32.gmra.mrb[8].mxu1 %vm550_vm0, %v899_v58 }
 0x254   : > { %v1909_v59 = vpop.f32.mrb[0].mxu1 }
 0x255   : > { %v1911_v60 = vpop.f32.mrb[1].mxu1 }
 0x25c   : > { %v1002_v8 = vpop.f32.mrb[2].mxu1 }
 0x25d   : > { %v1003_v0 = vadd.f32 %v1002_v8, %v907_v61  ;;  %v1004_v1 = vpop.f32.mrb[3].mxu1 }
 0x25e   : > { %v1005_v2 = vadd.f32 %v1004_v1, %v907_v61 }
 0x25f   : > { %vm1025_vm9 = vcmp.ge.f32.partialorder %v1003_v0, 0.0  ;;  %v1033_v4 = vmul.f32 0.2, %v1003_v0 }
 0x260   : > { %vm1026_vm10 = vcmp.ge.f32.partialorder %v1005_v2, 0.0  ;;  %v1034_v6 = vmul.f32 0.2, %v1005_v2  ;;  %v1008_v7 = vpop.f32.mrb[4].mxu1 }
 0x261   : > { %v1041_v10 = vsel %vm1025_vm9, %v1003_v0, %v1033_v4  ;;  %v1009_v11 = vadd.f32 %v1008_v7, %v912_v62  ;;  %v1010_v12 = vpop.f32.mrb[5].mxu1  ;;  %v1049_v7 = vlaneseq }
 0x262   : > { %v1094_v13 = vsub.f32 %v1916_v3, %v1041_v10  ;;  %v1042_v14 = vsel %vm1026_vm10, %v1005_v2, %v1034_v6  ;;  %v1011_v15 = vadd.f32 %v1010_v12, %v912_v62 }
 0x263   : > { %v1095_v17 = vsub.f32 %v1918_v5, %v1042_v14  ;;  %vm1027_vm11 = vcmp.ge.f32.partialorder %v1009_v11, 0.0  ;;  %v1035_v18 = vmul.f32 0.2, %v1009_v11 }
 0x264   : > { %v1126_v19 = vmul.f32 %v1109_v16, %v1094_v13  ;;  %vm1028_vm12 = vcmp.ge.f32.partialorder %v1011_v15, 0.0  ;;  %v1036_v20 = vmul.f32 0.2, %v1011_v15  ;;  %v1014_v21 = vpop.f32.mrb[6].mxu1 }
 0x265   : > { %v1043_v22 = vsel %vm1027_vm11, %v1009_v11, %v1035_v18  ;;  %v1015_v23 = vadd.f32 %v1014_v21, %v917_v63  ;;  %v1016_v24 = vpop.f32.mrb[7].mxu1  ;;  %v1127_v25 = vmul.f32 %v1109_v16, %v1095_v17  ;;  %v1935_v11 = vshrl.u32 %v1049_v7, 7 }
 0x266   : > { %v1096_v26 = vsub.f32 %v1916_v3, %v1043_v22  ;;  %v1044_v27 = vsel %vm1028_vm12, %v1011_v15, %v1036_v20  ;;  %v1017_v28 = vadd.f32 %v1016_v24, %v917_v63  ;;  %v1135_v32 = vmul.f32 %v1126_v19, %v1126_v19 }
 0x267   : > { %v1097_v30 = vsub.f32 %v1918_v5, %v1044_v27  ;;  %vm1029_vm13 = vcmp.ge.f32.partialorder %v1015_v23, 0.0  ;;  %v1037_v31 = vmul.f32 0.2, %v1015_v23  ;;  %v1136_v40 = vmul.f32 %v1127_v25, %v1127_v25 }
 0x268   : > { %v1128_v33 = vmul.f32 %v1114_v29, %v1096_v26  ;;  %vm1030_vm14 = vcmp.ge.f32.partialorder %v1017_v28, 0.0  ;;  %v1038_v34 = vmul.f32 0.2, %v1017_v28  ;;  %v1020_v35 = vpop.f32.mrb[8].mxu1  ;;  %vm1051_vm4 = vcmp.lt.s32.totalorder %v1935_v11, 4 }
 0x269   : > { %v1045_v36 = vsel %vm1029_vm13, %v1015_v23, %v1037_v31  ;;  %v1021_v37 = vadd.f32 %v1020_v35, %v922_v9  ;;  %v1022_v38 = vpop.f32.mrb[9].mxu1  ;;  %v1129_v39 = vmul.f32 %v1114_v29, %v1097_v30 }
 0x26a   : > { %v1137_v49 = vmul.f32 %v1128_v33, %v1128_v33  ;;  %v1098_v50 = vsub.f32 %v1916_v3, %v1045_v36  ;;  %v1046_v51 = vsel %vm1030_vm14, %v1017_v28, %v1038_v34  ;;  %v1023_v44 = vadd.f32 %v1022_v38, %v922_v9 }
 0x26b   : > { %v1099_v41 = vsub.f32 %v1918_v5, %v1046_v51  ;;  %vm1031_vm15 = vcmp.ge.f32.partialorder %v1021_v37, 0.0  ;;  %v1039_v42 = vmul.f32 0.2, %v1021_v37  ;;  %v1138_v43 = vmul.f32 %v1129_v39, %v1129_v39 }
 0x26c   : > { %vm1032_vm1 = vcmp.ge.f32.partialorder %v1023_v44, 0.0  ;;  %v1040_v48 = vmul.f32 0.2, %v1023_v44  ;;  %v1450_v45 = vpack.c.bf16 %v1137_v49, %v1135_v32  ;;  %v1130_v53 = vmul.f32 %v1119_v46, %v1098_v50 }
 0x26d   : > { %v1047_v47 = vsel %vm1031_vm15, %v1021_v37, %v1039_v42  ;;  %v1448_v52 = vpack.c.bf16 %v1138_v43, %v1136_v40  ;;  %v1131_v58 = vmul.f32 %v1119_v46, %v1099_v41 }
 0x26e   : > { %v1100_v54 = vsub.f32 %v1916_v3, %v1047_v47  ;;  %v1048_v55 = vsel %vm1032_vm1, %v1023_v44, %v1040_v48  ;;  %v1139_v8 = vmul.f32 %v1130_v53, %v1130_v53  ;;  %v1134_v3 = vld [vmem:[%s2001_s12] sm:$0xff] }
 0x26f   : > { %v1101_v57 = vsub.f32 %v1918_v5, %v1048_v55  ;;  %1449 = vmatprep.subr.bf16.mxu0 %v1448_v52  ;;  %v1140_v0 = vmul.f32 %v1131_v58, %v1131_v58  ;;  %v814_v5 = vpop.permute.xlu0 %813 }
 0x270   : > { %v1132_v61 = vmul.f32 %v1124_v56, %v1100_v54  ;;  %1451 = vmatpush1.bf16.msra.mxu0 %v1450_v45  ;;  %v886_v6 = vadd.f32 %v1909_v59, %v814_v5  ;;  %v888_v9 = vadd.f32 %v1911_v60, %v814_v5 }
 0x271   : > { %v1133_v62 = vmul.f32 %v1124_v56, %v1101_v57 }
 0x272   : > { %v1141_v63 = vmul.f32 %v1132_v61, %v1132_v61  ;;  %v892_v10 = vmul.f32 0.2, %v886_v6  ;;  %vm890_vm2 = vcmp.ge.f32.partialorder %v886_v6, 0.0  ;;  %v893_v12 = vmul.f32 0.2, %v888_v9 }
 0x273   : > { %v1142_v1 = vmul.f32 %v1133_v62, %v1133_v62  ;;  %vm891_vm3 = vcmp.ge.f32.partialorder %v888_v9, 0.0  ;;  %v1227_v62 = vpop.permute.xlu1 %1226 }
 0x274   : > { %v1454_v2 = vpack.c.bf16 %v1141_v63, %v1139_v8  ;;  %v894_v13 = vsel %vm890_vm2, %v886_v6, %v892_v10  ;;  %v895_v14 = vsel %vm891_vm3, %v888_v9, %v893_v12 }
 0x275   : > { %v1452_v4 = vpack.c.bf16 %v1142_v1, %v1140_v0  ;;  %v1054_v15 = vsel %vm1051_vm4, %v894_v13, -1e+30  ;;  %v1055_v16 = vsel %vm1051_vm4, %v895_v14, -1e+30 }
 0x276   : > { %v1056_v17 = vrot.slane %v1054_v15, 4  ;;  %v1062_v18 = vrot.slane %v1055_v16, 4 }
 0x277   : > { %1453 = vmatprep.subr.bf16.mxu0 %v1452_v4 }
 0x278   : > { %1455 = vmatpush1.bf16.msra.mxu0 %v1454_v2  ;;  %v1057_v19 = vmax.f32 %v1054_v15, %v1056_v17  ;;  %v1063_v59 = vmax.f32 %v1055_v16, %v1062_v18 }
 0x27a   : > { %v1058_v20 = vrot.slane %v1057_v19, 2  ;;  %v1064_v21 = vrot.slane %v1063_v59, 2 }
 0x27b   : > { %1416 = vmatmul.mubr.msk.f32.vlgmr.msra.gmra.mrb[8].mxu0 %vm550_vm0, %v1134_v3  ;;  %vm1287_vm0 = vcmp.lt.s32.totalorder %v1049_v7, 256 }
 0x27c   : > { %v1059_v60 = vmax.f32 %v1057_v19, %v1058_v20  ;;  %v1065_v22 = vmax.f32 %v1063_v59, %v1064_v21 }
 0x27e   : > { %v1060_v23 = vrot.slane %v1059_v60, 1  ;;  %v1066_v24 = vrot.slane %v1065_v22, 1 }
 0x280   : > { %v1061_v25 = vmax.f32 %v1059_v60, %v1060_v23  ;;  %v1067_v26 = vmax.f32 %v1065_v22, %v1066_v24 }
 0x282   : > { %v1068_v27 = vsub.f32 %v1054_v15, %v1061_v25  ;;  %v1069_v28 = vsub.f32 %v1055_v16, %v1067_v26 }
 0x284   : > { %v1070_v29 = vmul.f32 1.442695, %v1068_v27  ;;  %v1072_v30 = vmul.f32 1.442695, %v1069_v28 }
 0x286   : > { %1517 = vpow2.f32 %v1070_v29 }
 0x287   : > { %1519 = vpow2.f32 %v1072_v30 }
 0x290   : > { %v1518_v31 = vpop.eup %1517 }
 0x291   : > { %v1520_v32 = vpop.eup %1519  ;;  %v1074_v33 = vrot.slane %v1518_v31, 4 }
 0x292   : > { %v1080_v34 = vrot.slane %v1520_v32, 4 }
 0x293   : > { %v1075_v35 = vadd.f32 %v1518_v31, %v1074_v33 }
 0x294   : > { %v1081_v36 = vadd.f32 %v1520_v32, %v1080_v34  ;;  %v1634_v32 = vmov 1966171168  }
 0x295   : > { %v1076_v37 = vrot.slane %v1075_v35, 2  ;;  %v1271_v33 = vunpack.c.l.s4 %v1634_v32 }
 0x296   : > { %v1082_v38 = vrot.slane %v1081_v36, 2 }
 0x297   : > { %v1077_v39 = vadd.f32 %v1076_v37, %v1075_v35  ;;  %v1272_v35 = vunpack.c.0.s8 %v1271_v33 }
 0x298   : > { %v1083_v40 = vadd.f32 %v1082_v38, %v1081_v36 }
 0x299   : > { %v1078_v49 = vrot.slane %v1077_v39, 1 }
 0x29a   : > { %v1084_v50 = vrot.slane %v1083_v40, 1 }
 0x29b   : > { %v1079_v51 = vadd.f32 %v1078_v49, %v1077_v39 }
 0x29c   : > { %v1085_v44 = vadd.f32 %v1084_v50, %v1083_v40  ;;  %v1275_v40 = vsub.s32 %v1272_v35, %v1935_v11 }
 0x29d   : > { %1521 = vlog2.f32 %v1079_v51 }
 0x29e   : > { %1523 = vlog2.f32 %v1085_v44 }
 0x2a7   : > { %v1522_v41 = vpop.eup %1521 }
 0x2a8   : > { %v1524_v42 = vpop.eup %1523  ;;  %v1087_v43 = vmul.f32 0.6931472, %v1522_v41 }
 0x2a9   : > { %v1089_v48 = vmul.f32 0.6931472, %v1524_v42 }
 0x2aa   : > { %v1090_v45 = vadd.f32 %v1087_v43, %v1061_v25 }
 0x2ab   : > { %v1091_v46 = vadd.f32 %v1089_v48, %v1067_v26 }
 0x2ac   : > { %v1092_v47 = vsub.f32 %v1054_v15, %v1090_v45 }
 0x2ad   : > { %v1093_v52 = vsub.f32 %v1055_v16, %v1091_v46 }
 0x2ae   : > { %v1217_v54 = vadd.f32 -7.351508, %v1092_v47 }
 0x2af   : > { %v1218_v57 = vadd.f32 -7.351508, %v1093_v52 }
 0x34e   : > { %v1212_v53 = vpop.f32.mrb[8].mxu0 }
 0x34f   : > { %v1219_v55 = vmul.f32 0.5, %v1212_v53  ;;  %v1214_v56 = vpop.f32.mrb[9].mxu0 }
 0x350   : > { %v1220_v58 = vmul.f32 0.5, %v1214_v56 }
 0x351   : > { %v1221_v61 = vsub.f32 %v1217_v54, %v1219_v55 }
 0x352   : > { %v1222_v8 = vsub.f32 %v1218_v57, %v1220_v58 }
 0x353   : > { %v1229_v63 = vsub.f32 %v1221_v61, %v1227_v62 }
 0x354   : > { %v1230_v0 = vsub.f32 %v1222_v8, %v1227_v62 }
 0x355   : > { %v1231_v1 = vrot.slane %v1229_v63, 4 }
 0x356   : > { %v1237_v2 = vrot.slane %v1230_v0, 4 }
 0x357   : > { %v1232_v4 = vmax.f32 %v1229_v63, %v1231_v1 }
 0x358   : > { %v1238_v3 = vmax.f32 %v1230_v0, %v1237_v2 }
 0x359   : > { %v1233_v5 = vrot.slane %v1232_v4, 2 }
 0x35a   : > { %v1239_v6 = vrot.slane %v1238_v3, 2 }
 0x35b   : > { %v1234_v9 = vmax.f32 %v1232_v4, %v1233_v5 }
 0x35c   : > { %v1240_v10 = vmax.f32 %v1238_v3, %v1239_v6 }
 0x35d   : > { %v1235_v12 = vrot.slane %v1234_v9, 1 }
 0x35e   : > { %v1241_v13 = vrot.slane %v1240_v10, 1 }
 0x35f   : > { %v1236_v14 = vmax.f32 %v1234_v9, %v1235_v12 }
 0x360   : > { %v1242_v15 = vmax.f32 %v1240_v10, %v1241_v13 }
 0x361   : > { %v1243_v16 = vsub.f32 %v1229_v63, %v1236_v14 }
 0x362   : > { %v1244_v17 = vsub.f32 %v1230_v0, %v1242_v15 }
 0x363   : > { %v1245_v18 = vmul.f32 1.442695, %v1243_v16 }
 0x364   : > { %v1247_v19 = vmul.f32 1.442695, %v1244_v17 }
 0x365   : > { %1525 = vpow2.f32 %v1245_v18 }
 0x366   : > { %1527 = vpow2.f32 %v1247_v19 }
 0x36f   : > { %v1526_v59 = vpop.eup %1525 }
 0x370   : > { %v1528_v20 = vpop.eup %1527  ;;  %v1249_v21 = vrot.slane %v1526_v59, 4 }
 0x371   : > { %v1255_v60 = vrot.slane %v1528_v20, 4 }
 0x372   : > { %v1250_v22 = vadd.f32 %v1526_v59, %v1249_v21 }
 0x373   : > { %v1256_v23 = vadd.f32 %v1528_v20, %v1255_v60 }
 0x374   : > { %v1251_v24 = vrot.slane %v1250_v22, 2 }
 0x375   : > { %v1257_v25 = vrot.slane %v1256_v23, 2 }
 0x376   : > { %v1252_v26 = vadd.f32 %v1251_v24, %v1250_v22 }
 0x377   : > { %v1258_v27 = vadd.f32 %v1257_v25, %v1256_v23 }
 0x378   : > { %v1253_v28 = vrot.slane %v1252_v26, 1 }
 0x379   : > { %v1259_v29 = vrot.slane %v1258_v27, 1 }
 0x37a   : > { %v1254_v30 = vadd.f32 %v1253_v28, %v1252_v26 }
 0x37b   : > { %v1260_v31 = vadd.f32 %v1259_v29, %v1258_v27 }
 0x37c   : > { %1529 = vlog2.f32 %v1254_v30 }
 0x37d   : > { %1531 = vlog2.f32 %v1260_v31 }
 0x386   : > { %v1530_v34 = vpop.eup %1529 }
 0x387   : > { %v1532_v36 = vpop.eup %1531  ;;  %v1262_v37 = vmul.f32 0.6931472, %v1530_v34 }
 0x388   : > { %v1264_v38 = vmul.f32 0.6931472, %v1532_v36 }
 0x389   : > { %v1265_v39 = vadd.f32 %v1262_v37, %v1236_v14 }
 0x38a   : > { %v1266_v49 = vadd.f32 %v1264_v38, %v1242_v15 }
 0x38c   : > { %v1269_v50 = vcombine.low %v1265_v39, %v1266_v49 }
 0x38e   : > { %v1276_v51 = vrot.slane %v1269_v50, %v1275_v40 }
 0x390   : > { %v1283_v44 = vrot.slane %v1276_v51, %v1275_v40 }
 0x392   : > { %1289 = vst.msk [vmem:[%s503_s15] sm:$0x3] %vm1287_vm0, %v1283_v44 }
 0x393   : > { %1574 = shalt.err (!%p1571_p13)
}
 0x394   : > { %s1575_s13 = scalar_lea.hbm %s1945_s24, 32  ;;  %s1579_s15 = scalar_lea.hbm %s2025_s22, 64 }
 0x395   : > { %p1576_p2 = scmp.ne.s32.totalorder %s1945_s24, %s1575_s13  ;;  %p1580_p10 = scmp.lt.u32.totalorder %s1945_s24, %s2025_s22 }
 0x396   : > { %p1581_p11 = scmp.lt.u32.totalorder %s1579_s15, %s1575_s13  ;;  %p1583_p3 = scmp.lt.u32.totalorder %s1575_s13, %s1945_s24 }
 0x397   : > { %p1577_p5 = pnand %p1576_p2, %p2026_p0 }
 0x398   : > { %p1582_p12 = por %p1581_p11, %p1580_p10 }
 0x399   : > { %p1578_p6 = pneg %p1577_p5 }
 0x39a   : > { %p1584_p4 = por %p1583_p3, %p1582_p12 }
 0x39c   : > { %p1585_p7 = pnand %p1584_p4, %p1578_p6 }
 0x39e   : > { %1588 = shalt.err (!%p1585_p7)
}
 0x39f   : > { %1460 = dma.vmem_to_hbm [thread:$0]  (%p2026_p0), %s1947_s25, 32, %s1945_s24, %s1291_s23  }
 0x3a0 PF: > { %s2027_s18 = sld [smem:[#allocation9_spill]]  ;;  %s2028_s29 = sld [smem:[#allocation12_spill]] }
 0x3a6   : > { %s1317_s14 = sand.u32 1, %s2027_s18   ;;  %p2029_p8 = scmp.ne.s32.totalorder %s2028_s29, 0 }
 0x3a7   : > { %s1318_s21 = scalar_lea.sflag [#allocation5], %s1317_s14 }
 0x3a8   : > { %p1467_p9 = pnand %p1397_p1, %p2029_p8 }
 0x3aa   : > { %1610 = dma.done.wait (!%p1467_p9), %s1318_s21, 32  }
 0x3ab   : > { %1612 = vsyncadd (!%p1467_p9), %s1318_s21, 4294967264  ;;  %s2030_s28 = sld [smem:[#allocation10_spill]]  ;;  %s2031_s13 = sld [smem:[#allocation11_spill]] }
 0x3ac   : > { %s2032_s25 = smov %s1619_s26  ;;  %s2033_s26 = smov %s1623_s27 }
 0x3b1   : > { %p24_p13 = scmp.ge.s32.totalorder %s2030_s28, 4   ;;  %s2034_s27 = smov %s2031_s13 }
 0x3b3   :  { %26 = sbr.rel (!%p24_p13) target bundleno = 6 (0x6), region = 143 }
 0x3ba   :  { %1323 = vsyncpa [#allocation4], 1 }
 0x3bb   :  { %1325 = vsyncpa [#allocation4 + $0x1], 1 }
 0x3bc   :  { %1326 = vsyncpa [#allocation5], 1 }
 0x3bd   :  { %1328 = vsyncpa [#allocation5 + $0x1], 1 }

</bundles_post_ra>
